<compile_context>
chip_gen: v6e
topology: v6e:2x2x1
jax: 0.10.0
libtpu: 0.0.40
codegen_flags: <defaults>
</compile_context>

<pallas_src>
import functools

import jax
import jax.numpy as jnp
from jax import lax
from jax.experimental import pallas as pl
from jax.experimental.pallas import tpu as pltpu

SELU_ALPHA = 1.6732632423543772
SELU_SCALE = 1.0507009873554805


def _selu(x):
    # selu(x) = scale * (max(0, x) + min(0, alpha * (exp(x) - 1)))
    # exp is taken on min(x, 0) so the not-taken branch never produces inf.
    # Runs in x.dtype: f32 on v5e, bf16 on v6e/v7x (packed VPU/EUP lanes).
    neg = SELU_ALPHA * (jnp.exp(jnp.minimum(x, 0.0)) - 1.0)
    return SELU_SCALE * jnp.where(x > 0, x, neg)


def gmm_d_kernel(x_ref, w_in_ref, b_in_ref, w_hid_ref, b_hid_ref,
                 w_out_ref, b_out_ref, o_ref, *, mxu_dtype, epilogue_dtype):
    ep = epilogue_dtype

    # ---- Layer 0: fold the x transpose into the contraction. ----
    # x tile is batch-major (tb, D) exactly as it sits in HBM.  Contract the
    # D axis of both operands: (H, D) . (tb, D) -> feature-major (H, tb) with
    # the batch tile on the 128-lane axis.  D = 8, so this matmul is
    # negligible and stays in f32.
    h = lax.dot_general(
        w_in_ref[...], x_ref[...],
        dimension_numbers=(((1,), (1,)), ((), ())),
        preferred_element_type=jnp.float32)              # (H, tb) f32
    h = _selu(h.astype(ep) + b_in_ref[...])              # bias (H, 1) broadcasts

    # ---- Hidden layers: bf16 MXU operands, f32 accumulation. ----
    # Weights/biases arrive pre-cast from the wrapper; no per-step weight
    # casts here.  L is tiny (3), so a static unroll is fine.
    # TODO(synk): switch to lax.fori_loop(..., unroll=2) if nlayers grows large.
    n_hidden_layers = w_hid_ref.shape[0]                 # compile-time constant
    for i in range(n_hidden_layers):
        hm = jnp.dot(w_hid_ref[i], h.astype(mxu_dtype),
                     preferred_element_type=jnp.float32)  # (H, tb) f32
        h = _selu(hm.astype(ep) + b_hid_ref[i])

    # ---- Output head: (1, H) @ (H, tb) -> lane-dense (1, tb) f32 row. ----
    o_ref[...] = jnp.dot(w_out_ref[...], h.astype(mxu_dtype),
                         preferred_element_type=jnp.float32) + b_out_ref[...]


def _device_kind():
    try:
        return jax.devices()[0].device_kind.lower()
    except Exception:
        return ""


def _default_epilogue_dtype(kind=None):
    """bf16 epilogue where VPU/EUP are bf16-capable (v6e / v7x); f32 elsewhere."""
    kind = _device_kind() if kind is None else kind.lower()
    if ("v6" in kind) or ("v7" in kind) or ("7x" in kind) or ("trillium" in kind):
        return jnp.bfloat16
    return jnp.float32


def _default_tb(batch, kind=None):
    """Batch tile: multiple of 128 (lane-dense), capped at 1024 (vreg pressure).

    v7x has two TensorCores -> keep the grid >= 2 so "parallel" shards tiles.
    v5e / v6e are single-TC -> largest tile to amortize per-grid-step overhead.
    """
    kind = _device_kind() if kind is None else kind.lower()
    b128 = max(128, ((batch + 127) // 128) * 128)
    if ("7x" in kind or "v7" in kind) and b128 >= 256:
        return min(512, max(128, (b128 // 2) // 128 * 128))
    return min(1024, b128)


def gmm_d_forward(x, params, *, tb=None, mxu_dtype=jnp.bfloat16,
                  epilogue_dtype=None):
    """Pallas forward for GMM_D.  x: (B, ninput) float32 -> (B,) float32."""
    w_in, b_in, w_hid, b_hid, w_out, b_out = params
    B, D = x.shape
    H = w_in.shape[0]
    L = w_hid.shape[0]

    if epilogue_dtype is None:
        epilogue_dtype = _default_epilogue_dtype()
    if tb is None:
        tb = _default_tb(B)
    assert tb % 128 == 0 and tb <= 1024, "tb must be a multiple of 128, <= 1024"

    # Pad the batch so B % tb == 0 (padded rows are finite garbage, sliced off).
    Bp = ((B + tb - 1) // tb) * tb
    if Bp != B:
        x = jnp.pad(x, ((0, Bp - B), (0, 0)))

    # One-time tiny param casts (~13 KiB total): weights -> MXU dtype,
    # biases -> epilogue dtype.  First-layer weights stay f32 (see kernel).
    w_hid_c = w_hid.astype(mxu_dtype)
    w_out_c = w_out.astype(mxu_dtype)
    b_in_c = b_in.astype(epilogue_dtype)
    b_hid_c = b_hid.astype(epilogue_dtype)
    b_out_c = b_out.astype(jnp.float32)

    flops = 2 * Bp * (D * H + L * H * H + H)
    transcendentals = Bp * H * (L + 1)                    # one exp per SELU elem
    bytes_accessed = int(x.nbytes + w_in.nbytes + b_in_c.nbytes
                         + w_hid_c.nbytes + b_hid_c.nbytes
                         + w_out_c.nbytes + b_out_c.nbytes + 4 * Bp)

    out = pl.pallas_call(
        functools.partial(gmm_d_kernel, mxu_dtype=mxu_dtype,
                          epilogue_dtype=epilogue_dtype),
        out_shape=jax.ShapeDtypeStruct((1, Bp), jnp.float32),
        grid_spec=pltpu.PrefetchScalarGridSpec(
            num_scalar_prefetch=0,
            grid=(Bp // tb,),
            in_specs=[
                pl.BlockSpec((tb, D), lambda i: (i, 0)),        # x tile (batch-major)
                pl.BlockSpec((H, D), lambda i: (0, 0)),         # W_in (f32)
                pl.BlockSpec((H, 1), lambda i: (0, 0)),         # b_in
                pl.BlockSpec((L, H, H), lambda i: (0, 0, 0)),   # W_hidden stack (bf16)
                pl.BlockSpec((L, H, 1), lambda i: (0, 0, 0)),   # b_hidden stack
                pl.BlockSpec((1, H), lambda i: (0, 0)),         # W_out (bf16)
                pl.BlockSpec((1, 1), lambda i: (0, 0)),         # b_out (f32)
            ],
            out_specs=pl.BlockSpec((1, tb), lambda i: (0, i)),
        ),
        compiler_params=pltpu.CompilerParams(
            dimension_semantics=("parallel",)),
        cost_estimate=pl.CostEstimate(flops=flops,
                                      transcendentals=transcendentals,
                                      bytes_accessed=bytes_accessed),
    )(x, w_in, b_in_c, w_hid_c, b_hid_c, w_out_c, b_out_c)

    # .squeeze() in the PyTorch module: (1, Bp) -> (B,)
    return out[0, :B]


def init_params(key, ninput, nhidden, nlayers):
    """Synthetic init matching PyTorch Linear default scaling.

    Weights are stored PyTorch-native (fan_out, fan_in); biases are (fan_out, 1)
    columns so they broadcast over the lane (batch) axis inside the kernel.
    """
    n_hidden_layers = nlayers - 2 + 2  # faithful to the original module

    def linear(k, fan_in, fan_out):
        kw, kb = jax.random.split(k)
        bound = 1.0 / jnp.sqrt(fan_in)
        w = jax.random.uniform(kw, (fan_out, fan_in), jnp.float32, -bound, bound)
        b = jax.random.uniform(kb, (fan_out, 1), jnp.float32, -bound, bound)
        return w, b

    keys = jax.random.split(key, n_hidden_layers + 2)
    w_in, b_in = linear(keys[0], ninput, nhidden)            # (H, D), (H, 1)
    w_hid_list, b_hid_list = [], []
    for i in range(n_hidden_layers):
        w, b = linear(keys[1 + i], nhidden, nhidden)
        w_hid_list.append(w)
        b_hid_list.append(b)
    w_hid = jnp.stack(w_hid_list, axis=0)                    # (L, H, H)
    b_hid = jnp.stack(b_hid_list, axis=0)                    # (L, H, 1)
    w_out, b_out = linear(keys[-1], nhidden, 1)              # (1, H), (1, 1)
    return (w_in, b_in, w_hid, b_hid, w_out, b_out)


def reference_forward(x, params, *, mxu_dtype=jnp.float32,
                      epilogue_dtype=jnp.float32):
    """Pure-JAX reference, optionally precision-matched to the kernel."""
    w_in, b_in, w_hid, b_hid, w_out, b_out = params
    ep = epilogue_dtype

    h = lax.dot_general(w_in, x, dimension_numbers=(((1,), (1,)), ((), ())),
                        preferred_element_type=jnp.float32)      # (H, B)
    h = _selu(h.astype(ep) + b_in.astype(ep))
    for i in range(w_hid.shape[0]):
        hm = jnp.dot(w_hid[i].astype(mxu_dtype), h.astype(mxu_dtype),
                     preferred_element_type=jnp.float32)
        h = _selu(hm.astype(ep) + b_hid[i].astype(ep))
    out = jnp.dot(w_out.astype(mxu_dtype), h.astype(mxu_dtype),
                  preferred_element_type=jnp.float32) + b_out
    return out[0]


if __name__ == "__main__":
    # args.gmm_dim = 8, args.gmm_hidden = 32, args.gmm_nlayers = 3
    ninput, nhidden, nlayers = 8, 32, 3
    batch = 256   # small demo batch; exercises the tiling path

    key = jax.random.PRNGKey(0)
    kx, kp = jax.random.split(key)
    x = jax.random.normal(kx, (batch, ninput), jnp.float32)
    params = init_params(kp, ninput, nhidden, nlayers)

    mxu_dtype = jnp.bfloat16
    epilogue_dtype = _default_epilogue_dtype()

    out = gmm_d_forward(x, params, mxu_dtype=mxu_dtype,
                        epilogue_dtype=epilogue_dtype)
    out = jax.block_until_ready(out)
    assert out.shape == (batch,), out.shape
    assert bool(jnp.all(jnp.isfinite(out)))

    # Precision-matched reference (same MXU / epilogue dtype placement).
    ref_matched = reference_forward(x, params, mxu_dtype=mxu_dtype,
                                    epilogue_dtype=epilogue_dtype)
    assert jnp.allclose(out, ref_matched, atol=5e-2, rtol=5e-2), \
        float(jnp.max(jnp.abs(out - ref_matched)))

    # Loose sanity check against the full-f32 module semantics.
    ref_f32 = reference_forward(x, params, mxu_dtype=jnp.float32,
                                epilogue_dtype=jnp.float32)
    assert jnp.allclose(out, ref_f32, atol=2e-1, rtol=2e-1), \
        float(jnp.max(jnp.abs(out - ref_f32)))

    # Non-tile-aligned batch exercises the zero-padding path.
    b_odd = 200
    out_odd = jax.block_until_ready(
        gmm_d_forward(x[:b_odd], params, mxu_dtype=mxu_dtype,
                      epilogue_dtype=epilogue_dtype))
    assert out_odd.shape == (b_odd,), out_odd.shape
    assert jnp.allclose(out_odd, ref_matched[:b_odd], atol=5e-2, rtol=5e-2), \
        float(jnp.max(jnp.abs(out_odd - ref_matched[:b_odd])))

    print("KERNEL_OK")
</pallas_src>

<mosaic_0001>
module attributes {stable_mosaic.version = 11 : i64} {
  func.func @gmm_d_kernel(%arg0: i32, %arg1: memref<256x8xf32, #tpu.memory_space<vmem>>, %arg2: memref<32x8xf32, #tpu.memory_space<vmem>>, %arg3: memref<32x1xf32, #tpu.memory_space<vmem>>, %arg4: memref<3x32x32xbf16, #tpu.memory_space<vmem>>, %arg5: memref<3x32x1xf32, #tpu.memory_space<vmem>>, %arg6: memref<1x32xbf16, #tpu.memory_space<vmem>>, %arg7: memref<1x1xf32, #tpu.memory_space<vmem>>, %arg8: memref<1x256xf32, #tpu.memory_space<vmem>>) attributes {dimension_semantics = [#tpu.dimension_semantics<parallel>], iteration_bounds = array<i64: 1>, scalar_prefetch = 0 : i64, scratch_operands = 0 : i64, tpu.core_type = #tpu.core_type<tc>, window_params = [{transform_indices = @transform_0, window_bounds = array<i64: 256, 8>}, {pipeline_mode = #tpu.pipeline_mode<synchronous>, transform_indices = @transform_1, window_bounds = array<i64: 32, 8>}, {pipeline_mode = #tpu.pipeline_mode<synchronous>, transform_indices = @transform_2, window_bounds = array<i64: 32, 1>}, {pipeline_mode = #tpu.pipeline_mode<synchronous>, transform_indices = @transform_3, window_bounds = array<i64: 3, 32, 32>}, {pipeline_mode = #tpu.pipeline_mode<synchronous>, transform_indices = @transform_4, window_bounds = array<i64: 3, 32, 1>}, {pipeline_mode = #tpu.pipeline_mode<synchronous>, transform_indices = @transform_5, window_bounds = array<i64: 1, 32>}, {pipeline_mode = #tpu.pipeline_mode<synchronous>, transform_indices = @transform_6, window_bounds = array<i64: 1, 1>}, {transform_indices = @transform_7, window_bounds = array<i64: 1, 256>}]} {
    %c0 = arith.constant 0 : index
    %c0_0 = arith.constant 0 : index
    %0 = vector.load %arg2[%c0, %c0_0] : memref<32x8xf32, #tpu.memory_space<vmem>>, vector<32x8xf32>
    %c0_1 = arith.constant 0 : index
    %c0_2 = arith.constant 0 : index
    %1 = vector.load %arg1[%c0_1, %c0_2] : memref<256x8xf32, #tpu.memory_space<vmem>>, vector<256x8xf32>
    %cst = arith.constant dense<0.000000e+00> : vector<32x256xf32>
    %2 = tpu.matmul %0, %1, %cst {dimension_numbers = #tpu.dot_dimension_numbers<[1], [1], [0], [0], [0, 0, 1, 0], [], []>} : vector<32x8xf32>, vector<256x8xf32>, vector<32x256xf32> -> vector<32x256xf32>
    %c0_3 = arith.constant 0 : index
    %c0_4 = arith.constant 0 : index
    %3 = vector.load %arg3[%c0_3, %c0_4] : memref<32x1xf32, #tpu.memory_space<vmem>>, vector<32x1xf32>
    %4 = vector.broadcast %3 : vector<32x1xf32> to vector<32x256xf32>
    %5 = arith.addf %2, %4 : vector<32x256xf32>
    %cst_5 = arith.constant 0.000000e+00 : f32
    %6 = vector.broadcast %cst_5 : f32 to vector<32x256xf32>
    %7 = arith.minimumf %5, %6 : vector<32x256xf32>
    %8 = math.exp %7 : vector<32x256xf32>
    %cst_6 = arith.constant 1.000000e+00 : f32
    %9 = vector.broadcast %cst_6 : f32 to vector<32x256xf32>
    %10 = arith.subf %8, %9 : vector<32x256xf32>
    %cst_7 = arith.constant 1.67326319 : f32
    %11 = vector.broadcast %cst_7 : f32 to vector<32x256xf32>
    %12 = arith.mulf %11, %10 : vector<32x256xf32>
    %cst_8 = arith.constant 0.000000e+00 : f32
    %13 = vector.broadcast %cst_8 : f32 to vector<32x256xf32>
    %14 = arith.cmpf ogt, %5, %13 : vector<32x256xf32>
    %15 = arith.select %14, %5, %12 : vector<32x256xi1>, vector<32x256xf32>
    %cst_9 = arith.constant 1.05070102 : f32
    %16 = vector.broadcast %cst_9 : f32 to vector<32x256xf32>
    %17 = arith.mulf %16, %15 : vector<32x256xf32>
    %c0_10 = arith.constant 0 : index
    %c0_11 = arith.constant 0 : index
    %c0_12 = arith.constant 0 : index
    %18 = vector.load %arg4[%c0_10, %c0_11, %c0_12] : memref<3x32x32xbf16, #tpu.memory_space<vmem>>, vector<1x32x32xbf16>
    %19 = vector.shape_cast %18 : vector<1x32x32xbf16> to vector<32x32xbf16>
    %20 = arith.truncf %17 : vector<32x256xf32> to vector<32x256xbf16>
    %cst_13 = arith.constant dense<0.000000e+00> : vector<32x256xf32>
    %21 = tpu.matmul %19, %20, %cst_13 {dimension_numbers = #tpu.dot_dimension_numbers<[1], [0], [0], [1], [0, 0, 1, 1], [], []>} : vector<32x32xbf16>, vector<32x256xbf16>, vector<32x256xf32> -> vector<32x256xf32>
    %c0_14 = arith.constant 0 : index
    %c0_15 = arith.constant 0 : index
    %c0_16 = arith.constant 0 : index
    %22 = vector.load %arg5[%c0_14, %c0_15, %c0_16] : memref<3x32x1xf32, #tpu.memory_space<vmem>>, vector<1x32x1xf32>
    %23 = vector.shape_cast %22 : vector<1x32x1xf32> to vector<32x1xf32>
    %24 = vector.broadcast %23 : vector<32x1xf32> to vector<32x256xf32>
    %25 = arith.addf %21, %24 : vector<32x256xf32>
    %cst_17 = arith.constant 0.000000e+00 : f32
    %26 = vector.broadcast %cst_17 : f32 to vector<32x256xf32>
    %27 = arith.minimumf %25, %26 : vector<32x256xf32>
    %28 = math.exp %27 : vector<32x256xf32>
    %cst_18 = arith.constant 1.000000e+00 : f32
    %29 = vector.broadcast %cst_18 : f32 to vector<32x256xf32>
    %30 = arith.subf %28, %29 : vector<32x256xf32>
    %cst_19 = arith.constant 1.67326319 : f32
    %31 = vector.broadcast %cst_19 : f32 to vector<32x256xf32>
    %32 = arith.mulf %31, %30 : vector<32x256xf32>
    %cst_20 = arith.constant 0.000000e+00 : f32
    %33 = vector.broadcast %cst_20 : f32 to vector<32x256xf32>
    %34 = arith.cmpf ogt, %25, %33 : vector<32x256xf32>
    %35 = arith.select %34, %25, %32 : vector<32x256xi1>, vector<32x256xf32>
    %cst_21 = arith.constant 1.05070102 : f32
    %36 = vector.broadcast %cst_21 : f32 to vector<32x256xf32>
    %37 = arith.mulf %36, %35 : vector<32x256xf32>
    %c1 = arith.constant 1 : index
    %c0_22 = arith.constant 0 : index
    %c0_23 = arith.constant 0 : index
    %38 = vector.load %arg4[%c1, %c0_22, %c0_23] : memref<3x32x32xbf16, #tpu.memory_space<vmem>>, vector<1x32x32xbf16>
    %39 = vector.shape_cast %38 : vector<1x32x32xbf16> to vector<32x32xbf16>
    %40 = arith.truncf %37 : vector<32x256xf32> to vector<32x256xbf16>
    %cst_24 = arith.constant dense<0.000000e+00> : vector<32x256xf32>
    %41 = tpu.matmul %39, %40, %cst_24 {dimension_numbers = #tpu.dot_dimension_numbers<[1], [0], [0], [1], [0, 0, 1, 1], [], []>} : vector<32x32xbf16>, vector<32x256xbf16>, vector<32x256xf32> -> vector<32x256xf32>
    %c1_25 = arith.constant 1 : index
    %c0_26 = arith.constant 0 : index
    %c0_27 = arith.constant 0 : index
    %42 = vector.load %arg5[%c1_25, %c0_26, %c0_27] : memref<3x32x1xf32, #tpu.memory_space<vmem>>, vector<1x32x1xf32>
    %43 = vector.shape_cast %42 : vector<1x32x1xf32> to vector<32x1xf32>
    %44 = vector.broadcast %43 : vector<32x1xf32> to vector<32x256xf32>
    %45 = arith.addf %41, %44 : vector<32x256xf32>
    %cst_28 = arith.constant 0.000000e+00 : f32
    %46 = vector.broadcast %cst_28 : f32 to vector<32x256xf32>
    %47 = arith.minimumf %45, %46 : vector<32x256xf32>
    %48 = math.exp %47 : vector<32x256xf32>
    %cst_29 = arith.constant 1.000000e+00 : f32
    %49 = vector.broadcast %cst_29 : f32 to vector<32x256xf32>
    %50 = arith.subf %48, %49 : vector<32x256xf32>
    %cst_30 = arith.constant 1.67326319 : f32
    %51 = vector.broadcast %cst_30 : f32 to vector<32x256xf32>
    %52 = arith.mulf %51, %50 : vector<32x256xf32>
    %cst_31 = arith.constant 0.000000e+00 : f32
    %53 = vector.broadcast %cst_31 : f32 to vector<32x256xf32>
    %54 = arith.cmpf ogt, %45, %53 : vector<32x256xf32>
    %55 = arith.select %54, %45, %52 : vector<32x256xi1>, vector<32x256xf32>
    %cst_32 = arith.constant 1.05070102 : f32
    %56 = vector.broadcast %cst_32 : f32 to vector<32x256xf32>
    %57 = arith.mulf %56, %55 : vector<32x256xf32>
    %c2 = arith.constant 2 : index
    %c0_33 = arith.constant 0 : index
    %c0_34 = arith.constant 0 : index
    %58 = vector.load %arg4[%c2, %c0_33, %c0_34] : memref<3x32x32xbf16, #tpu.memory_space<vmem>>, vector<1x32x32xbf16>
    %59 = vector.shape_cast %58 : vector<1x32x32xbf16> to vector<32x32xbf16>
    %60 = arith.truncf %57 : vector<32x256xf32> to vector<32x256xbf16>
    %cst_35 = arith.constant dense<0.000000e+00> : vector<32x256xf32>
    %61 = tpu.matmul %59, %60, %cst_35 {dimension_numbers = #tpu.dot_dimension_numbers<[1], [0], [0], [1], [0, 0, 1, 1], [], []>} : vector<32x32xbf16>, vector<32x256xbf16>, vector<32x256xf32> -> vector<32x256xf32>
    %c2_36 = arith.constant 2 : index
    %c0_37 = arith.constant 0 : index
    %c0_38 = arith.constant 0 : index
    %62 = vector.load %arg5[%c2_36, %c0_37, %c0_38] : memref<3x32x1xf32, #tpu.memory_space<vmem>>, vector<1x32x1xf32>
    %63 = vector.shape_cast %62 : vector<1x32x1xf32> to vector<32x1xf32>
    %64 = vector.broadcast %63 : vector<32x1xf32> to vector<32x256xf32>
    %65 = arith.addf %61, %64 : vector<32x256xf32>
    %cst_39 = arith.constant 0.000000e+00 : f32
    %66 = vector.broadcast %cst_39 : f32 to vector<32x256xf32>
    %67 = arith.minimumf %65, %66 : vector<32x256xf32>
    %68 = math.exp %67 : vector<32x256xf32>
    %cst_40 = arith.constant 1.000000e+00 : f32
    %69 = vector.broadcast %cst_40 : f32 to vector<32x256xf32>
    %70 = arith.subf %68, %69 : vector<32x256xf32>
    %cst_41 = arith.constant 1.67326319 : f32
    %71 = vector.broadcast %cst_41 : f32 to vector<32x256xf32>
    %72 = arith.mulf %71, %70 : vector<32x256xf32>
    %cst_42 = arith.constant 0.000000e+00 : f32
    %73 = vector.broadcast %cst_42 : f32 to vector<32x256xf32>
    %74 = arith.cmpf ogt, %65, %73 : vector<32x256xf32>
    %75 = arith.select %74, %65, %72 : vector<32x256xi1>, vector<32x256xf32>
    %cst_43 = arith.constant 1.05070102 : f32
    %76 = vector.broadcast %cst_43 : f32 to vector<32x256xf32>
    %77 = arith.mulf %76, %75 : vector<32x256xf32>
    %c0_44 = arith.constant 0 : index
    %c0_45 = arith.constant 0 : index
    %78 = vector.load %arg6[%c0_44, %c0_45] : memref<1x32xbf16, #tpu.memory_space<vmem>>, vector<1x32xbf16>
    %79 = arith.truncf %77 : vector<32x256xf32> to vector<32x256xbf16>
    %cst_46 = arith.constant dense<0.000000e+00> : vector<1x256xf32>
    %80 = tpu.matmul %78, %79, %cst_46 {dimension_numbers = #tpu.dot_dimension_numbers<[1], [0], [0], [1], [0, 0, 1, 1], [], []>} : vector<1x32xbf16>, vector<32x256xbf16>, vector<1x256xf32> -> vector<1x256xf32>
    %c0_47 = arith.constant 0 : index
    %c0_48 = arith.constant 0 : index
    %81 = vector.load %arg7[%c0_47, %c0_48] : memref<1x1xf32, #tpu.memory_space<vmem>>, vector<1x1xf32>
    %82 = vector.broadcast %81 : vector<1x1xf32> to vector<1x256xf32>
    %83 = arith.addf %80, %82 : vector<1x256xf32>
    %c0_49 = arith.constant 0 : index
    %c0_50 = arith.constant 0 : index
    %84 = vector.load %arg8[%c0_49, %c0_50] : memref<1x256xf32, #tpu.memory_space<vmem>>, vector<1x256xf32>
    tpu.vector_store %arg8[%c0_49, %c0_50], %83 {strides = array<i32>} : memref<1x256xf32, #tpu.memory_space<vmem>>, vector<1x256xf32>,
    return
  }
  func.func @transform_0(%arg0: i32) -> (i32, i32) {
    %c0_i32 = arith.constant 0 : i32
    %c0_i32_0 = arith.constant 0 : i32
    return %arg0, %c0_i32 : i32, i32
  }
  func.func @transform_1(%arg0: i32) -> (i32, i32) {
    %c0_i32 = arith.constant 0 : i32
    %c0_i32_0 = arith.constant 0 : i32
    %c0_i32_1 = arith.constant 0 : i32
    return %c0_i32, %c0_i32_0 : i32, i32
  }
  func.func @transform_2(%arg0: i32) -> (i32, i32) {
    %c0_i32 = arith.constant 0 : i32
    %c0_i32_0 = arith.constant 0 : i32
    %c0_i32_1 = arith.constant 0 : i32
    return %c0_i32, %c0_i32_0 : i32, i32
  }
  func.func @transform_3(%arg0: i32) -> (i32, i32, i32) {
    %c0_i32 = arith.constant 0 : i32
    %c0_i32_0 = arith.constant 0 : i32
    %c0_i32_1 = arith.constant 0 : i32
    %c0_i32_2 = arith.constant 0 : i32
    return %c0_i32, %c0_i32_0, %c0_i32_1 : i32, i32, i32
  }
  func.func @transform_4(%arg0: i32) -> (i32, i32, i32) {
    %c0_i32 = arith.constant 0 : i32
    %c0_i32_0 = arith.constant 0 : i32
    %c0_i32_1 = arith.constant 0 : i32
    %c0_i32_2 = arith.constant 0 : i32
    return %c0_i32, %c0_i32_0, %c0_i32_1 : i32, i32, i32
  }
  func.func @transform_5(%arg0: i32) -> (i32, i32) {
    %c0_i32 = arith.constant 0 : i32
    %c0_i32_0 = arith.constant 0 : i32
    %c0_i32_1 = arith.constant 0 : i32
    return %c0_i32, %c0_i32_0 : i32, i32
  }
  func.func @transform_6(%arg0: i32) -> (i32, i32) {
    %c0_i32 = arith.constant 0 : i32
    %c0_i32_0 = arith.constant 0 : i32
    %c0_i32_1 = arith.constant 0 : i32
    return %c0_i32, %c0_i32_0 : i32, i32
  }
  func.func @transform_7(%arg0: i32) -> (i32, i32) {
    %c0_i32 = arith.constant 0 : i32
    %c0_i32_0 = arith.constant 0 : i32
    return %c0_i32, %arg0 : i32, i32
  }
}

</mosaic_0001>

<bundles_post_ra>
// kernel: tpu_custom_call.1
= control target key start
LH: loop header
LB: loop body
LE: loop exit
PB: predicated region body
PF: predicated region fallthrough
CT: control target
= control target key end

     0   :  { %s1533_s0 = inlined_call_operand.vmem [shape: f32[256,8], index: 0, kind: input, shape index: {}]   ;;  %s1534_s1 = inlined_call_operand.vmem [shape: f32[32,8], index: 1, kind: input, shape index: {}]   ;;  %s1535_s2 = inlined_call_operand.vmem [shape: f32[32,1], index: 2, kind: input, shape index: {}]   ;;  %s1536_s3 = inlined_call_operand.vmem [shape: bf16[3,32,32], index: 3, kind: input, shape index: {}]   ;;  %s1537_s4 = inlined_call_operand.vmem [shape: f32[3,32,1], index: 4, kind: input, shape index: {}]   ;;  %s1538_s5 = inlined_call_operand.vmem [shape: bf16[1,32], index: 5, kind: input, shape index: {}]   ;;  %s1539_s6 = inlined_call_operand.<no memory space> [shape: f32[1,1], index: 6, kind: input, shape index: {}]   ;;  %s1540_s7 = inlined_call_operand.hbm [shape: f32[1,256], index: 7, kind: output, shape index: {}]  }
   0x1   :  { %v12_v0 = vstv %s1539_s6 }
   0x2   :  { %13 = vst [vmem:[#allocation2] sm:$0x1] %v12_v0 }
   0x3   :  { %v65_v1 = vld [vmem:[%s1533_s0 + $0xf8] sm:$0xff]  ;;  %vm90_vm0 = vcmask 64512   ;;  %v64_v3 = vld [vmem:[%s1533_s0 + $0xf0] sm:$0xff]  ;;  %v1182_v4 = vmov 0   ;;  %v63_v6 = vld [vmem:[%s1533_s0 + $0xe8] sm:$0xff] }
   0x4   :  { %v49_v2 = vld [vmem:[%s1533_s0 + $0x78] sm:$0xff]  ;;  %1045 = vmatprep.subr.msk.mxu0 %vm90_vm0, %v65_v1  ;;  %1088 = vset.pattern.permute.xlu0 %v1182_v4  ;;  %v48_v5 = vld [vmem:[%s1533_s0 + $0x70] sm:$0xff]  ;;  %v47_v7 = vld [vmem:[%s1533_s0 + $0x68] sm:$0xff] }
   0x5   :  { %1046 = vmatpush3.xpose.msk.msra.mxu0 %vm90_vm0, %v49_v2  ;;  %1089 = vset.pattern.permute.xlu1 %v1182_v4  ;;  %v62_v8 = vld [vmem:[%s1533_s0 + $0xe0] sm:$0xff]  ;;  %v61_v11 = vld [vmem:[%s1533_s0 + $0xd8] sm:$0xff]  ;;  %v68_v12 = vld [vmem:[%s1535_s2 + $0x10] sm:$0xff] }
   0x6   :  { %1047 = vmatprep.subr.msk.mxu0 %vm90_vm0, %v64_v3  ;;  %433 = vmatprep.mubr.bf16.mxu1 %v1182_v4  ;;  %v1261_v9 = vld [vmem:[%s1534_s1] sm:$0xff]  ;;  %v69_v14 = vld [vmem:[%s1535_s2 + $0x18] sm:$0xff]  ;;  %v67_v16 = vld [vmem:[%s1535_s2 + $0x8] sm:$0xff] }
   0x7   :  { %v46_v10 = vld [vmem:[%s1533_s0 + $0x60] sm:$0xff]  ;;  %1077 = vmatprep.mubr.msk.f32.mxu0 %vm90_vm0, %v1261_v9  ;;  %82 = vperm.xlu0 %1088, %v68_v12   ;;  %v45_v15 = vld [vmem:[%s1533_s0 + $0x58] sm:$0xff]  ;;  %v60_v17 = vld [vmem:[%s1533_s0 + $0xd0] sm:$0xff] }
   0x8   :  { %v66_v13 = vld [vmem:[%s1535_s2] sm:$0xff]  ;;  %v44_v18 = vld [vmem:[%s1533_s0 + $0x50] sm:$0xff]  ;;  %v363_v20 = vld [vmem:[%s1537_s4 + $0x18] sm:$0xff] }
   0x9   :  { %1048 = vmatpush3.xpose.msk.msra.mxu0 %vm90_vm0, %v48_v5  ;;  %72 = vperm.xlu1 %1089, %v66_v13   ;;  %v362_v19 = vld [vmem:[%s1537_s4 + $0x10] sm:$0xff]  ;;  %v59_v21 = vld [vmem:[%s1533_s0 + $0xc8] sm:$0xff] }
   0xa   :  { %1049 = vmatprep.subr.msk.mxu0 %vm90_vm0, %v63_v6 }
   0xb   :  { %87 = vperm.xlu0 %1088, %v69_v14  }
   0xd   :  { %1050 = vmatpush3.xpose.msk.msra.mxu0 %vm90_vm0, %v47_v7  ;;  %77 = vperm.xlu1 %1089, %v67_v16  }
   0xe   :  { %1051 = vmatprep.subr.msk.mxu0 %vm90_vm0, %v62_v8 }
   0xf   :  { %376 = vperm.xlu0 %1088, %v362_v19  }
  0x11   :  { %1052 = vmatpush3.xpose.msk.msra.mxu0 %vm90_vm0, %v46_v10 }
  0x12   :  { %1053 = vmatprep.subr.msk.mxu0 %vm90_vm0, %v61_v11 }
  0x15   :  { %1054 = vmatpush3.xpose.msk.msra.mxu0 %vm90_vm0, %v45_v15 }
  0x16   :  { %1055 = vmatprep.subr.msk.mxu0 %vm90_vm0, %v60_v17 }
  0x17   :  { %14 = vsyncpa [#allocation4], 0  ;;  %v360_v22 = vld [vmem:[%s1537_s4] sm:$0xff]  ;;  %381 = vperm.xlu1 %1089, %v363_v20   ;;  %v43_v23 = vld [vmem:[%s1533_s0 + $0x48] sm:$0xff]  ;;  %vm394_vm9 = vcmask 261120   ;;  %s1184_s2 = smov [#allocation3]  }
  0x18   :  { %v361_v24 = vld [vmem:[%s1537_s4 + $0x8] sm:$0xff]  ;;  %v58_v25 = vld [vmem:[%s1533_s0 + $0xc0] sm:$0xff]  ;;  %366 = vperm.xlu0 %1088, %v360_v22   ;;  %v1010_v26 = vld [vmem:[%s1537_s4 + $0x30] sm:$0xff] }
  0x19   :  { %1056 = vmatpush3.xpose.msk.msra.mxu0 %vm90_vm0, %v44_v18  ;;  %v42_v27 = vld [vmem:[%s1533_s0 + $0x40] sm:$0xff]  ;;  %v1011_v28 = vld [vmem:[%s1537_s4 + $0x38] sm:$0xff]  ;;  %v1009_v32 = vld [vmem:[%s1537_s4 + $0x28] sm:$0xff] }
  0x1a   :  { %1057 = vmatprep.subr.msk.mxu0 %vm90_vm0, %v59_v21  ;;  %v57_v29 = vld [vmem:[%s1533_s0 + $0xb8] sm:$0xff]  ;;  %v1008_v30 = vld [vmem:[%s1537_s4 + $0x20] sm:$0xff]  ;;  %v56_v33 = vld [vmem:[%s1533_s0 + $0xb0] sm:$0xff] }
  0x1b   :  { %371 = vperm.xlu1 %1089, %v361_v24   ;;  %v41_v31 = vld [vmem:[%s1533_s0 + $0x38] sm:$0xff]  ;;  %v1030_v34 = vld [vmem:[%s1537_s4 + $0x50] sm:$0xff]  ;;  %v55_v37 = vld [vmem:[%s1533_s0 + $0xa8] sm:$0xff] }
  0x1c   :  { %544 = vperm.xlu0 %1088, %v1010_v26   ;;  %v40_v35 = vld [vmem:[%s1533_s0 + $0x30] sm:$0xff]  ;;  %v1031_v36 = vld [vmem:[%s1537_s4 + $0x58] sm:$0xff]  ;;  %v1028_v38 = vld [vmem:[%s1537_s4 + $0x40] sm:$0xff] }
  0x1d   :  { %1058 = vmatpush3.xpose.msk.msra.mxu0 %vm90_vm0, %v43_v23  ;;  %v39_v39 = vld [vmem:[%s1533_s0 + $0x28] sm:$0xff]  ;;  %v54_v41 = vld [vmem:[%s1533_s0 + $0xa0] sm:$0xff]  ;;  %v53_v44 = vld [vmem:[%s1533_s0 + $0x98] sm:$0xff] }
  0x1e   :  { %1059 = vmatprep.subr.msk.mxu0 %vm90_vm0, %v58_v25  ;;  %v1029_v40 = vld [vmem:[%s1537_s4 + $0x48] sm:$0xff]  ;;  %v857_v42 = vld [vmem:[#allocation2] sm:$0x1]  ;;  %v37_v45 = vld [vmem:[%s1533_s0 + $0x18] sm:$0xff] }
  0x1f   :  { %549 = vperm.xlu1 %1089, %v1011_v28   ;;  %v38_v43 = vld [vmem:[%s1533_s0 + $0x20] sm:$0xff]  ;;  %v52_v46 = vld [vmem:[%s1533_s0 + $0x90] sm:$0xff]  ;;  %v51_v48 = vld [vmem:[%s1533_s0 + $0x88] sm:$0xff] }
  0x20   :  { %534 = vperm.xlu0 %1088, %v1008_v30   ;;  %v36_v47 = vld [vmem:[%s1533_s0 + $0x10] sm:$0xff]  ;;  %v35_v49 = vld [vmem:[%s1533_s0 + $0x8] sm:$0xff]  ;;  %v50_v50 = vld [vmem:[%s1533_s0 + $0x80] sm:$0xff] }
  0x21   :  { %1060 = vmatpush3.xpose.msk.msra.mxu0 %vm90_vm0, %v42_v27  ;;  %v34_v51 = vld [vmem:[%s1533_s0] sm:$0xff]  ;;  %v31_v52 = vld [vmem:[%s1534_s1 + $0x8] sm:$0xff]  ;;  %v32_v53 = vld [vmem:[%s1534_s1 + $0x10] sm:$0xff] }
  0x22   :  { %1061 = vmatprep.subr.msk.mxu0 %vm90_vm0, %v57_v29  ;;  %v33_v54 = vld [vmem:[%s1534_s1 + $0x18] sm:$0xff] }
  0x23   :  { %539 = vperm.xlu1 %1089, %v1009_v32  }
  0x24   :  { %711 = vperm.xlu0 %1088, %v1030_v34  }
  0x25   :  { %1062 = vmatpush3.xpose.msk.msra.mxu0 %vm90_vm0, %v41_v31 }
  0x26   :  { %1063 = vmatprep.subr.msk.mxu0 %vm90_vm0, %v56_v33 }
  0x27   :  { %716 = vperm.xlu1 %1089, %v1031_v36  }
  0x28   :  { %701 = vperm.xlu0 %1088, %v1028_v38  }
  0x29   :  { %1064 = vmatpush3.xpose.msk.msra.mxu0 %vm90_vm0, %v40_v35 }
  0x2a   :  { %1065 = vmatprep.subr.msk.mxu0 %vm90_vm0, %v55_v37 }
  0x2b   :  { %706 = vperm.xlu1 %1089, %v1029_v40  }
  0x2c   :  { %860 = vperm.xlu0 %1088, %v857_v42  }
  0x2d   :  { %1066 = vmatpush3.xpose.msk.msra.mxu0 %vm90_vm0, %v39_v39 }
  0x2e   :  { %1067 = vmatprep.subr.msk.mxu0 %vm90_vm0, %v54_v41 }
  0x31   :  { %1068 = vmatpush3.xpose.msk.msra.mxu0 %vm90_vm0, %v38_v43 }
  0x32   :  { %1069 = vmatprep.subr.msk.mxu0 %vm90_vm0, %v53_v44 }
  0x35   :  { %1070 = vmatpush3.xpose.msk.msra.mxu0 %vm90_vm0, %v37_v45 }
  0x36   :  { %1071 = vmatprep.subr.msk.mxu0 %vm90_vm0, %v52_v46 }
  0x39   :  { %1072 = vmatpush3.xpose.msk.msra.mxu0 %vm90_vm0, %v36_v47 }
  0x3a   :  { %1073 = vmatprep.subr.msk.mxu0 %vm90_vm0, %v51_v48 }
  0x3d   :  { %1074 = vmatpush3.xpose.msk.msra.mxu0 %vm90_vm0, %v35_v49 }
  0x3e   :  { %1075 = vmatprep.subr.msk.mxu0 %vm90_vm0, %v50_v50 }
  0x41   :  { %1076 = vmatpush3.xpose.msk.msra.mxu0 %vm90_vm0, %v34_v51 }
  0x44   :  { %1078 = vmatmul.mubr.msk.f32.vlgmr.msra.gmra.mxu0 %vm90_vm0, %v1261_v9 }
  0x45   :  { %1079 = vmatprep.mubr.msk.f32.mxu0 %vm90_vm0, %v31_v52 }
  0x48   :  { %1080 = vmatmul.mubr.msk.f32.gmra.mxu0 %vm90_vm0, %v31_v52 }
  0x49   :  { %1081 = vmatprep.mubr.msk.f32.mxu0 %vm90_vm0, %v32_v53 }
  0x4c   :  { %1082 = vmatmul.mubr.msk.f32.gmra.mxu0 %vm90_vm0, %v32_v53 }
  0x4d   :  { %1083 = vmatprep.mubr.msk.f32.mxu0 %vm90_vm0, %v33_v54 }
  0x50   :  { %1084 = vmatmul.mubr.msk.f32.gmra.mxu0 %vm90_vm0, %v33_v54 }
  0x82   :  { %v83_v63 = vpop.permute.xlu0 %82 }
  0x84   :  { %v73_v55 = vpop.permute.xlu1 %72 }
  0x86   :  { %v88_v13 = vpop.permute.xlu0 %87 }
  0x88   :  { %v78_v59 = vpop.permute.xlu1 %77 }
 0x104   :  { %v265_v56 = vpop.f32.mrf.mxu0 }
 0x105   :  { %v1436_v0 = vadd.f32 %v265_v56, %v73_v55 }
 0x106   :  { %v267_v57 = vpop.f32.mrf.mxu0 }
 0x107   :  { %v1431_v58 = vadd.f32 %v267_v57, %v73_v55  ;;  %v288_v8 = vmin.f32 %v1436_v0, 0.0  ;;  %vm328_vm8 = vcmp.gt.f32.partialorder %v1436_v0, 0.0 }
 0x108   :  { %v271_v60 = vpop.f32.mrf.mxu0 }
 0x109   :  { %v289_v61 = vmin.f32 %v1431_v58, 0.0  ;;  %v1434_v62 = vadd.f32 %v271_v60, %v78_v59  ;;  %v296_v20 = vmul.f32 1.442695, %v288_v8  ;;  %vm329_vm5 = vcmp.gt.f32.partialorder %v1431_v58, 0.0 }
 0x10a   :  { %v273_v1 = vpop.f32.mrf.mxu0 }
 0x10b   :  { %v290_v2 = vmin.f32 %v1434_v62, 0.0  ;;  %v274_v3 = vadd.f32 %v273_v1, %v78_v59  ;;  %v298_v6 = vmul.f32 1.442695, %v289_v61  ;;  %vm330_vm7 = vcmp.gt.f32.partialorder %v1434_v62, 0.0 }
 0x10c   :  { %v277_v5 = vpop.f32.mrf.mxu0 }
 0x10d   :  { %v1439_v7 = vadd.f32 %v277_v5, %v83_v63  ;;  %v291_v9 = vmin.f32 %v274_v3, 0.0  ;;  %v300_v14 = vmul.f32 1.442695, %v290_v2  ;;  %1096 = vpow2.f32 %v298_v6 }
 0x10e   :  { %v279_v10 = vpop.f32.mrf.mxu0  ;;  %vm331_vm2 = vcmp.gt.f32.partialorder %v274_v3, 0.0 }
 0x10f   :  { %v292_v11 = vmin.f32 %v1439_v7, 0.0  ;;  %v280_v12 = vadd.f32 %v279_v10, %v83_v63  ;;  %v302_v15 = vmul.f32 1.442695, %v291_v9  ;;  %vm332_vm4 = vcmp.gt.f32.partialorder %v1439_v7, 0.0 }
 0x110   :  { %v283_v16 = vpop.f32.mrf.mxu0 }
 0x111   :  { %v304_v17 = vmul.f32 1.442695, %v292_v11  ;;  %v293_v18 = vmin.f32 %v280_v12, 0.0  ;;  %v284_v19 = vadd.f32 %v283_v16, %v88_v13  ;;  %1098 = vpow2.f32 %v302_v15  ;;  %v377_v11 = vpop.permute.xlu0 %376 }
 0x112   :  { %v285_v21 = vpop.f32.mrf.mxu0  ;;  %vm333_vm3 = vcmp.gt.f32.partialorder %v280_v12, 0.0 }
 0x113   :  { %1100 = vpow2.f32 %v304_v17  ;;  %v306_v22 = vmul.f32 1.442695, %v293_v18  ;;  %v294_v23 = vmin.f32 %v284_v19, 0.0  ;;  %v286_v24 = vadd.f32 %v285_v21, %v88_v13 }
 0x114   :  { %1102 = vpow2.f32 %v300_v14  ;;  %vm334_vm1 = vcmp.gt.f32.partialorder %v284_v19, 0.0 }
 0x115   :  { %1104 = vpow2.f32 %v306_v22  ;;  %v308_v25 = vmul.f32 1.442695, %v294_v23  ;;  %v295_v26 = vmin.f32 %v286_v24, 0.0  ;;  %vm335_vm6 = vcmp.gt.f32.partialorder %v286_v24, 0.0  ;;  %v367_v14 = vpop.permute.xlu0 %366 }
 0x116   :  { %1106 = vpow2.f32 %v296_v20 }
 0x117   :  { %1108 = vpow2.f32 %v308_v25  ;;  %v310_v27 = vmul.f32 1.442695, %v295_v26 }
 0x119   :  { %1110 = vpow2.f32 %v310_v27 }
 0x11a   :  { %v1097_v28 = vpop.eup %1096 }
 0x11b   :  { %v985_v38 = vadd.f32 -1.0, %v1097_v28 }
 0x11d   :  { %v321_v47 = vmul.f32 1.6732632, %v985_v38 }
 0x11e   :  { %v1099_v29 = vpop.eup %1098 }
 0x11f   :  { %v987_v33 = vadd.f32 -1.0, %v1099_v29  ;;  %v337_v56 = vsel %vm329_vm5, %v1431_v58, %v321_v47 }
 0x120   :  { %v1101_v30 = vpop.eup %1100  ;;  %v345_v5 = vmul.f32 1.050701, %v337_v56 }
 0x121   :  { %v1103_v31 = vpop.eup %1102  ;;  %v988_v36 = vadd.f32 -1.0, %v1101_v30  ;;  %v323_v41 = vmul.f32 1.6732632, %v987_v33 }
 0x122   :  { %v1105_v32 = vpop.eup %1104  ;;  %v986_v39 = vadd.f32 -1.0, %v1103_v31 }
 0x123   :  { %v1107_v34 = vpop.eup %1106  ;;  %v989_v35 = vadd.f32 -1.0, %v1105_v32  ;;  %v324_v45 = vmul.f32 1.6732632, %v988_v36  ;;  %v339_v51 = vsel %vm331_vm2, %v274_v3, %v323_v41 }
 0x124   :  { %v1109_v37 = vpop.eup %1108  ;;  %v984_v44 = vadd.f32 -1.0, %v1107_v34  ;;  %v322_v49 = vmul.f32 1.6732632, %v986_v39  ;;  %v347_v61 = vmul.f32 1.050701, %v339_v51 }
 0x125   :  { %v990_v40 = vadd.f32 -1.0, %v1109_v37  ;;  %v325_v42 = vmul.f32 1.6732632, %v989_v35  ;;  %v340_v55 = vsel %vm332_vm4, %v1439_v7, %v324_v45 }
 0x126   :  { %v1111_v43 = vpop.eup %1110  ;;  %v320_v54 = vmul.f32 1.6732632, %v984_v44  ;;  %v338_v60 = vsel %vm330_vm7, %v1434_v62, %v322_v49  ;;  %v348_v2 = vmul.f32 1.050701, %v340_v55  ;;  %v357_v58 = vpack.c.bf16 %v347_v61, %v345_v5  ;;  %v1090_v62 = vld [vmem:[%s1536_s3] sm:$0xff]  }
 0x127   :  { %v326_v46 = vmul.f32 1.6732632, %v990_v40  ;;  %v991_v48 = vadd.f32 -1.0, %v1111_v43  ;;  %v341_v53 = vsel %vm333_vm3, %v280_v12, %v325_v42  ;;  %v346_v8 = vmul.f32 1.050701, %v338_v60  ;;  %v382_v12 = vpop.permute.xlu1 %381 }
 0x128   :  { %v349_v63 = vmul.f32 1.050701, %v341_v53  ;;  %v336_v3 = vsel %vm328_vm8, %v1436_v0, %v320_v54  ;;  %v1091_v0 = vld [vmem:[%s1536_s3 + $0x8] sm:$0xff]  }
 0x129   :  { %v342_v50 = vsel %vm334_vm1, %v284_v19, %v326_v46  ;;  %v327_v52 = vmul.f32 1.6732632, %v991_v48  ;;  %v344_v9 = vmul.f32 1.050701, %v336_v3 }
 0x12a   :  { %v350_v59 = vmul.f32 1.050701, %v342_v50 }
 0x12b   :  { %v343_v57 = vsel %vm335_vm6, %v286_v24, %v327_v52  ;;  %v356_v10 = vpack.c.bf16 %v346_v8, %v344_v9  ;;  %v372_v17 = vpop.permute.xlu1 %371 }
 0x12c   :  { %v351_v1 = vmul.f32 1.050701, %v343_v57  ;;  %v358_v7 = vpack.c.bf16 %v350_v59, %v348_v2 }
 0x12e   :  { %v359_v6 = vpack.c.bf16 %v351_v1, %v349_v63 }
 0x130   :  { %413 = vmatprep.subr.bf16.mxu1 %v359_v6 }
 0x131   :  { %414 = vmatpush1.bf16.msra.mxu1 %v358_v7 }
 0x132   :  { %415 = vmatprep.subr.bf16.mxu1 %v357_v58 }
 0x135   :  { %416 = vmatpush1.bf16.msra.mxu1 %v356_v10 }
 0x138   :  { %994 = vmatmul.mubr.msk.bf16.vlgmr.msra.gmra.mxu1 %vm394_vm9, %v1090_v62 }
 0x139   :  { %443 = vmatprep.mubr.bf16.mxu1 %v1182_v4 }
 0x140   :  { %995 = vmatmul.mubr.msk.bf16.gmra.mxu1 %vm394_vm9, %v1091_v0 }
 0x141   :  { %600 = vmatprep.mubr.bf16.mxu1 %v1182_v4 }
 0x1f8   :  { %v435_v13 = vpop.f32.mrf.mxu1 }
 0x1f9   :  { %v1466_v21 = vadd.f32 %v435_v13, %v367_v14 }
 0x1fa   :  { %v437_v15 = vpop.f32.mrf.mxu1 }
 0x1fb   :  { %v1461_v16 = vadd.f32 %v437_v15, %v367_v14  ;;  %v454_v28 = vmin.f32 %v1466_v21, 0.0  ;;  %vm494_vm1 = vcmp.gt.f32.partialorder %v1466_v21, 0.0 }
 0x1fc   :  { %v439_v18 = vpop.f32.mrf.mxu1 }
 0x1fd   :  { %v455_v19 = vmin.f32 %v1461_v16, 0.0  ;;  %v1464_v20 = vadd.f32 %v439_v18, %v372_v17  ;;  %v462_v39 = vmul.f32 1.442695, %v454_v28  ;;  %vm495_vm14 = vcmp.gt.f32.partialorder %v1461_v16, 0.0 }
 0x1fe   :  { %v441_v22 = vpop.f32.mrf.mxu1 }
 0x1ff   :  { %v456_v23 = vmin.f32 %v1464_v20, 0.0  ;;  %v442_v24 = vadd.f32 %v441_v22, %v372_v17  ;;  %v464_v26 = vmul.f32 1.442695, %v455_v19  ;;  %vm496_vm0 = vcmp.gt.f32.partialorder %v1464_v20, 0.0 }
 0x200   :  { %v445_v25 = vpop.f32.mrf.mxu1 }
 0x201   :  { %v446_v27 = vadd.f32 %v445_v25, %v377_v11  ;;  %v457_v29 = vmin.f32 %v442_v24, 0.0  ;;  %v466_v33 = vmul.f32 1.442695, %v456_v23  ;;  %1112 = vpow2.f32 %v464_v26 }
 0x202   :  { %v447_v30 = vpop.f32.mrf.mxu1  ;;  %vm497_vm11 = vcmp.gt.f32.partialorder %v442_v24, 0.0 }
 0x203   :  { %v458_v31 = vmin.f32 %v446_v27, 0.0  ;;  %v448_v32 = vadd.f32 %v447_v30, %v377_v11  ;;  %v468_v34 = vmul.f32 1.442695, %v457_v29  ;;  %vm498_vm13 = vcmp.gt.f32.partialorder %v446_v27, 0.0  ;;  %v545_v30 = vpop.permute.xlu0 %544 }
 0x204   :  { %v449_v35 = vpop.f32.mrf.mxu1 }
 0x205   :  { %v470_v36 = vmul.f32 1.442695, %v458_v31  ;;  %v459_v37 = vmin.f32 %v448_v32, 0.0  ;;  %v450_v38 = vadd.f32 %v449_v35, %v382_v12  ;;  %1114 = vpow2.f32 %v468_v34  ;;  %v550_v31 = vpop.permute.xlu1 %549 }
 0x206   :  { %v451_v40 = vpop.f32.mrf.mxu1  ;;  %vm499_vm12 = vcmp.gt.f32.partialorder %v448_v32, 0.0 }
 0x207   :  { %1116 = vpow2.f32 %v470_v36  ;;  %v472_v41 = vmul.f32 1.442695, %v459_v37  ;;  %v460_v42 = vmin.f32 %v450_v38, 0.0  ;;  %v452_v43 = vadd.f32 %v451_v40, %v382_v12 }
 0x208   :  { %1118 = vpow2.f32 %v466_v33  ;;  %vm500_vm10 = vcmp.gt.f32.partialorder %v450_v38, 0.0  ;;  %v535_v33 = vpop.permute.xlu0 %534 }
 0x209   :  { %1120 = vpow2.f32 %v472_v41  ;;  %v474_v44 = vmul.f32 1.442695, %v460_v42  ;;  %v461_v45 = vmin.f32 %v452_v43, 0.0  ;;  %vm501_vm15 = vcmp.gt.f32.partialorder %v452_v43, 0.0  ;;  %v540_v36 = vpop.permute.xlu1 %539 }
 0x20a   :  { %1122 = vpow2.f32 %v462_v39 }
 0x20b   :  { %1124 = vpow2.f32 %v474_v44  ;;  %v476_v46 = vmul.f32 1.442695, %v461_v45 }
 0x20d   :  { %1126 = vpow2.f32 %v476_v46 }
 0x20e   :  { %v1113_v47 = vpop.eup %1112 }
 0x20f   :  { %v997_v57 = vadd.f32 -1.0, %v1113_v47 }
 0x211   :  { %v487_v6 = vmul.f32 1.6732632, %v997_v57 }
 0x212   :  { %v1115_v48 = vpop.eup %1114 }
 0x213   :  { %v999_v52 = vadd.f32 -1.0, %v1115_v48  ;;  %v503_v12 = vsel %vm495_vm14, %v1461_v16, %v487_v6 }
 0x214   :  { %v1117_v49 = vpop.eup %1116 }
 0x215   :  { %v1119_v50 = vpop.eup %1118  ;;  %v1000_v54 = vadd.f32 -1.0, %v1117_v49  ;;  %v489_v61 = vmul.f32 1.6732632, %v999_v52 }
 0x216   :  { %v1121_v51 = vpop.eup %1120  ;;  %v998_v59 = vadd.f32 -1.0, %v1119_v50 }
 0x217   :  { %v1123_v53 = vpop.eup %1122  ;;  %v1001_v55 = vadd.f32 -1.0, %v1121_v51  ;;  %v490_v3 = vmul.f32 1.6732632, %v1000_v54  ;;  %v505_v9 = vsel %vm497_vm11, %v442_v24, %v489_v61  ;;  %v511_v24 = vmul.f32 1.050701, %v503_v12 }
 0x218   :  { %v1125_v56 = vpop.eup %1124  ;;  %v996_v2 = vadd.f32 -1.0, %v1123_v53  ;;  %v488_v7 = vmul.f32 1.6732632, %v998_v59  ;;  %v513_v17 = vmul.f32 1.050701, %v505_v9 }
 0x219   :  { %v1002_v60 = vadd.f32 -1.0, %v1125_v56  ;;  %v491_v63 = vmul.f32 1.6732632, %v1001_v55  ;;  %v506_v11 = vsel %vm498_vm13, %v446_v27, %v490_v3 }
 0x21a   :  { %v1127_v1 = vpop.eup %1126  ;;  %v486_v0 = vmul.f32 1.6732632, %v996_v2  ;;  %v504_v15 = vsel %vm496_vm0, %v1464_v20, %v488_v7  ;;  %v514_v22 = vmul.f32 1.050701, %v506_v11  ;;  %v524_v16 = vpack.c.bf16 %v513_v17, %v511_v24  ;;  %v1092_v20 = vld [vmem:[%s1536_s3 + $0x10] sm:$0xff]  }
 0x21b   :  { %v492_v5 = vmul.f32 1.6732632, %v1002_v60  ;;  %v1003_v8 = vadd.f32 -1.0, %v1127_v1  ;;  %v507_v10 = vsel %vm499_vm12, %v448_v32, %v491_v63  ;;  %v512_v26 = vmul.f32 1.050701, %v504_v15 }
 0x21c   :  { %v515_v18 = vmul.f32 1.050701, %v507_v10  ;;  %v502_v23 = vsel %vm494_vm1, %v1466_v21, %v486_v0  ;;  %v1093_v21 = vld [vmem:[%s1536_s3 + $0x18] sm:$0xff]  }
 0x21d   :  { %v508_v58 = vsel %vm500_vm10, %v450_v38, %v492_v5  ;;  %v493_v62 = vmul.f32 1.6732632, %v1003_v8  ;;  %v510_v28 = vmul.f32 1.050701, %v502_v23 }
 0x21e   :  { %v516_v13 = vmul.f32 1.050701, %v508_v58 }
 0x21f   :  { %v509_v14 = vsel %vm501_vm15, %v452_v43, %v493_v62  ;;  %v523_v29 = vpack.c.bf16 %v512_v26, %v510_v28 }
 0x220   :  { %v517_v19 = vmul.f32 1.050701, %v509_v14  ;;  %v525_v27 = vpack.c.bf16 %v516_v13, %v514_v22 }
 0x222   :  { %v526_v25 = vpack.c.bf16 %v517_v19, %v515_v18 }
 0x224   :  { %580 = vmatprep.subr.bf16.mxu1 %v526_v25 }
 0x225   :  { %581 = vmatpush1.bf16.msra.mxu1 %v525_v27 }
 0x226   :  { %582 = vmatprep.subr.bf16.mxu1 %v524_v16 }
 0x229   :  { %583 = vmatpush1.bf16.msra.mxu1 %v523_v29 }
 0x22c   :  { %1014 = vmatmul.mubr.msk.bf16.vlgmr.msra.gmra.mxu1 %vm394_vm9, %v1092_v20 }
 0x22d   :  { %610 = vmatprep.mubr.bf16.mxu1 %v1182_v4 }
 0x234   :  { %1015 = vmatmul.mubr.msk.bf16.gmra.mxu1 %vm394_vm9, %v1093_v21 }
 0x235   :  { %767 = vmatprep.mubr.bf16.mxu1 %v1182_v4 }
 0x2ec   :  { %v602_v32 = vpop.f32.mrf.mxu1 }
 0x2ed   :  { %v1491_v40 = vadd.f32 %v602_v32, %v535_v33 }
 0x2ee   :  { %v604_v34 = vpop.f32.mrf.mxu1 }
 0x2ef   :  { %v1486_v35 = vadd.f32 %v604_v34, %v535_v33  ;;  %v621_v47 = vmin.f32 %v1491_v40, 0.0  ;;  %vm661_vm10 = vcmp.gt.f32.partialorder %v1491_v40, 0.0 }
 0x2f0   :  { %v606_v37 = vpop.f32.mrf.mxu1 }
 0x2f1   :  { %v622_v38 = vmin.f32 %v1486_v35, 0.0  ;;  %v1489_v39 = vadd.f32 %v606_v37, %v540_v36  ;;  %v629_v59 = vmul.f32 1.442695, %v621_v47  ;;  %vm662_vm6 = vcmp.gt.f32.partialorder %v1486_v35, 0.0 }
 0x2f2   :  { %v608_v41 = vpop.f32.mrf.mxu1 }
 0x2f3   :  { %v623_v42 = vmin.f32 %v1489_v39, 0.0  ;;  %v609_v43 = vadd.f32 %v608_v41, %v540_v36  ;;  %v631_v45 = vmul.f32 1.442695, %v622_v38  ;;  %vm663_vm8 = vcmp.gt.f32.partialorder %v1489_v39, 0.0 }
 0x2f4   :  { %v612_v44 = vpop.f32.mrf.mxu1 }
 0x2f5   :  { %v613_v46 = vadd.f32 %v612_v44, %v545_v30  ;;  %v624_v48 = vmin.f32 %v609_v43, 0.0  ;;  %v633_v52 = vmul.f32 1.442695, %v623_v42  ;;  %1128 = vpow2.f32 %v631_v45 }
 0x2f6   :  { %v614_v49 = vpop.f32.mrf.mxu1  ;;  %vm664_vm3 = vcmp.gt.f32.partialorder %v609_v43, 0.0 }
 0x2f7   :  { %v625_v50 = vmin.f32 %v613_v46, 0.0  ;;  %v615_v51 = vadd.f32 %v614_v49, %v545_v30  ;;  %v635_v53 = vmul.f32 1.442695, %v624_v48  ;;  %vm665_vm5 = vcmp.gt.f32.partialorder %v613_v46, 0.0  ;;  %v712_v49 = vpop.permute.xlu0 %711 }
 0x2f8   :  { %v616_v54 = vpop.f32.mrf.mxu1 }
 0x2f9   :  { %v637_v55 = vmul.f32 1.442695, %v625_v50  ;;  %v626_v56 = vmin.f32 %v615_v51, 0.0  ;;  %v617_v57 = vadd.f32 %v616_v54, %v550_v31  ;;  %1130 = vpow2.f32 %v635_v53  ;;  %v717_v50 = vpop.permute.xlu1 %716 }
 0x2fa   :  { %v618_v60 = vpop.f32.mrf.mxu1  ;;  %vm666_vm4 = vcmp.gt.f32.partialorder %v615_v51, 0.0 }
 0x2fb   :  { %1132 = vpow2.f32 %v637_v55  ;;  %v639_v61 = vmul.f32 1.442695, %v626_v56  ;;  %v627_v63 = vmin.f32 %v617_v57, 0.0  ;;  %v619_v1 = vadd.f32 %v618_v60, %v550_v31 }
 0x2fc   :  { %1134 = vpow2.f32 %v633_v52  ;;  %vm667_vm2 = vcmp.gt.f32.partialorder %v617_v57, 0.0  ;;  %v702_v52 = vpop.permute.xlu0 %701 }
 0x2fd   :  { %1136 = vpow2.f32 %v639_v61  ;;  %v641_v2 = vmul.f32 1.442695, %v627_v63  ;;  %v628_v3 = vmin.f32 %v619_v1, 0.0  ;;  %vm668_vm7 = vcmp.gt.f32.partialorder %v619_v1, 0.0  ;;  %v707_v55 = vpop.permute.xlu1 %706 }
 0x2fe   :  { %1138 = vpow2.f32 %v629_v59 }
 0x2ff   :  { %1140 = vpow2.f32 %v641_v2  ;;  %v643_v5 = vmul.f32 1.442695, %v628_v3 }
 0x301   :  { %1142 = vpow2.f32 %v643_v5 }
 0x302   :  { %v1129_v6 = vpop.eup %1128 }
 0x303   :  { %v1017_v13 = vadd.f32 -1.0, %v1129_v6 }
 0x305   :  { %v654_v25 = vmul.f32 1.6732632, %v1017_v13 }
 0x306   :  { %v1131_v8 = vpop.eup %1130 }
 0x307   :  { %v1019_v10 = vadd.f32 -1.0, %v1131_v8  ;;  %v670_v31 = vsel %vm662_vm6, %v1486_v35, %v654_v25 }
 0x308   :  { %v1133_v7 = vpop.eup %1132 }
 0x309   :  { %v1135_v58 = vpop.eup %1134  ;;  %v1020_v0 = vadd.f32 -1.0, %v1133_v7  ;;  %v656_v17 = vmul.f32 1.6732632, %v1019_v10 }
 0x30a   :  { %v1137_v9 = vpop.eup %1136  ;;  %v1018_v14 = vadd.f32 -1.0, %v1135_v58 }
 0x30b   :  { %v1139_v62 = vpop.eup %1138  ;;  %v1021_v11 = vadd.f32 -1.0, %v1137_v9  ;;  %v657_v23 = vmul.f32 1.6732632, %v1020_v0  ;;  %v672_v28 = vsel %vm664_vm3, %v609_v43, %v656_v17  ;;  %v678_v43 = vmul.f32 1.050701, %v670_v31 }
 0x30c   :  { %v1141_v12 = vpop.eup %1140  ;;  %v1016_v22 = vadd.f32 -1.0, %v1139_v62  ;;  %v655_v27 = vmul.f32 1.6732632, %v1018_v14  ;;  %v680_v36 = vmul.f32 1.050701, %v672_v28 }
 0x30d   :  { %v1022_v15 = vadd.f32 -1.0, %v1141_v12  ;;  %v658_v18 = vmul.f32 1.6732632, %v1021_v11  ;;  %v673_v30 = vsel %vm665_vm5, %v613_v46, %v657_v23 }
 0x30e   :  { %v1143_v19 = vpop.eup %1142  ;;  %v653_v21 = vmul.f32 1.6732632, %v1016_v22  ;;  %v671_v34 = vsel %vm663_vm8, %v1489_v39, %v655_v27  ;;  %v681_v41 = vmul.f32 1.050701, %v673_v30  ;;  %v691_v35 = vpack.c.bf16 %v680_v36, %v678_v43  ;;  %v1094_v39 = vld [vmem:[%s1536_s3 + $0x20] sm:$0xff]  }
 0x30f   :  { %v659_v24 = vmul.f32 1.6732632, %v1022_v15  ;;  %v1023_v26 = vadd.f32 -1.0, %v1143_v19  ;;  %v674_v29 = vsel %vm666_vm4, %v615_v51, %v658_v18  ;;  %v679_v45 = vmul.f32 1.050701, %v671_v34 }
 0x310   :  { %v682_v37 = vmul.f32 1.050701, %v674_v29  ;;  %v669_v42 = vsel %vm661_vm10, %v1491_v40, %v653_v21  ;;  %v1095_v40 = vld [vmem:[%s1536_s3 + $0x28] sm:$0xff]  }
 0x311   :  { %v675_v16 = vsel %vm667_vm2, %v617_v57, %v659_v24  ;;  %v660_v20 = vmul.f32 1.6732632, %v1023_v26  ;;  %v677_v47 = vmul.f32 1.050701, %v669_v42 }
 0x312   :  { %v683_v32 = vmul.f32 1.050701, %v675_v16 }
 0x313   :  { %v676_v33 = vsel %vm668_vm7, %v619_v1, %v660_v20  ;;  %v690_v48 = vpack.c.bf16 %v679_v45, %v677_v47 }
 0x314   :  { %v684_v38 = vmul.f32 1.050701, %v676_v33  ;;  %v692_v46 = vpack.c.bf16 %v683_v32, %v681_v41 }
 0x316   :  { %v693_v44 = vpack.c.bf16 %v684_v38, %v682_v37 }
 0x318   :  { %747 = vmatprep.subr.bf16.mxu1 %v693_v44 }
 0x319   :  { %748 = vmatpush1.bf16.msra.mxu1 %v692_v46 }
 0x31a   :  { %749 = vmatprep.subr.bf16.mxu1 %v691_v35 }
 0x31d   :  { %750 = vmatpush1.bf16.msra.mxu1 %v690_v48 }
 0x320   :  { %1034 = vmatmul.mubr.msk.bf16.vlgmr.msra.gmra.mxu1 %vm394_vm9, %v1094_v39 }
 0x321   :  { %777 = vmatprep.mubr.bf16.mxu1 %v1182_v4 }
 0x328   :  { %1035 = vmatmul.mubr.msk.bf16.gmra.mxu1 %vm394_vm9, %v1095_v40 }
 0x329   :  { %902 = vmatprep.mubr.bf16.mxu1 %v1182_v4 }
 0x3e0   :  { %v769_v51 = vpop.f32.mrf.mxu1 }
 0x3e1   :  { %v1516_v60 = vadd.f32 %v769_v51, %v702_v52 }
 0x3e2   :  { %v771_v53 = vpop.f32.mrf.mxu1 }
 0x3e3   :  { %v1511_v54 = vadd.f32 %v771_v53, %v702_v52  ;;  %v788_v5 = vmin.f32 %v1516_v60, 0.0  ;;  %vm828_vm2 = vcmp.gt.f32.partialorder %v1516_v60, 0.0 }
 0x3e4   :  { %v773_v56 = vpop.f32.mrf.mxu1 }
 0x3e5   :  { %v789_v57 = vmin.f32 %v1511_v54, 0.0  ;;  %v1514_v59 = vadd.f32 %v773_v56, %v707_v55  ;;  %v796_v13 = vmul.f32 1.442695, %v788_v5  ;;  %vm829_vm15 = vcmp.gt.f32.partialorder %v1511_v54, 0.0 }
 0x3e6   :  { %v775_v61 = vpop.f32.mrf.mxu1 }
 0x3e7   :  { %v790_v63 = vmin.f32 %v1514_v59, 0.0  ;;  %v776_v1 = vadd.f32 %v775_v61, %v707_v55  ;;  %v798_v2 = vmul.f32 1.442695, %v789_v57  ;;  %vm830_vm1 = vcmp.gt.f32.partialorder %v1514_v59, 0.0 }
 0x3e8   :  { %v779_v4 = vpop.f32.mrf.mxu1 }
 0x3e9   :  { %v780_v3 = vadd.f32 %v779_v4, %v712_v49  ;;  %v791_v6 = vmin.f32 %v776_v1, 0.0  ;;  %v800_v9 = vmul.f32 1.442695, %v790_v63  ;;  %1144 = vpow2.f32 %v798_v2 }
 0x3ea   :  { %v781_v8 = vpop.f32.mrf.mxu1  ;;  %vm831_vm12 = vcmp.gt.f32.partialorder %v776_v1, 0.0 }
 0x3eb   :  { %v792_v7 = vmin.f32 %v780_v3, 0.0  ;;  %v782_v58 = vadd.f32 %v781_v8, %v712_v49  ;;  %v802_v10 = vmul.f32 1.442695, %v791_v6  ;;  %vm832_vm14 = vcmp.gt.f32.partialorder %v780_v3, 0.0 }
 0x3ec   :  { %v783_v62 = vpop.f32.mrf.mxu1  ;;  %v863_v6 = vlaneseq }
 0x3ed   :  { %v804_v0 = vmul.f32 1.442695, %v792_v7  ;;  %v793_v11 = vmin.f32 %v782_v58, 0.0  ;;  %v784_v12 = vadd.f32 %v783_v62, %v717_v50  ;;  %1146 = vpow2.f32 %v802_v10 }
 0x3ee   :  { %v785_v14 = vpop.f32.mrf.mxu1  ;;  %vm833_vm13 = vcmp.gt.f32.partialorder %v782_v58, 0.0  ;;  %v864_v8 = vshrl.u32 %v863_v6, 7 }
 0x3ef   :  { %1148 = vpow2.f32 %v804_v0  ;;  %v806_v15 = vmul.f32 1.442695, %v793_v11  ;;  %v794_v17 = vmin.f32 %v784_v12, 0.0  ;;  %v786_v18 = vadd.f32 %v785_v14, %v717_v50 }
 0x3f0   :  { %1150 = vpow2.f32 %v800_v9  ;;  %vm834_vm11 = vcmp.gt.f32.partialorder %v784_v12, 0.0  ;;  %v861_v9 = vpop.permute.xlu0 %860 }
 0x3f1   :  { %1152 = vpow2.f32 %v806_v15  ;;  %v808_v19 = vmul.f32 1.442695, %v794_v17  ;;  %v795_v22 = vmin.f32 %v786_v18, 0.0  ;;  %vm835_vm0 = vcmp.gt.f32.partialorder %v786_v18, 0.0 }
 0x3f2   :  { %1154 = vpow2.f32 %v796_v13 }
 0x3f3   :  { %1156 = vpow2.f32 %v808_v19  ;;  %v810_v23 = vmul.f32 1.442695, %v795_v22 }
 0x3f5   :  { %1158 = vpow2.f32 %v810_v23 }
 0x3f6   :  { %v1145_v24 = vpop.eup %1144 }
 0x3f7   :  { %v1037_v31 = vadd.f32 -1.0, %v1145_v24 }
 0x3f9   :  { %v821_v43 = vmul.f32 1.6732632, %v1037_v31 }
 0x3fa   :  { %v1147_v25 = vpop.eup %1146 }
 0x3fb   :  { %v1039_v28 = vadd.f32 -1.0, %v1147_v25  ;;  %v837_v49 = vsel %vm829_vm15, %v1511_v54, %v821_v43 }
 0x3fc   :  { %v1149_v26 = vpop.eup %1148  ;;  %v845_v63 = vmul.f32 1.050701, %v837_v49 }
 0x3fd   :  { %v1151_v27 = vpop.eup %1150  ;;  %v1040_v20 = vadd.f32 -1.0, %v1149_v26  ;;  %v823_v34 = vmul.f32 1.6732632, %v1039_v28 }
 0x3fe   :  { %v1153_v16 = vpop.eup %1152  ;;  %v1038_v32 = vadd.f32 -1.0, %v1151_v27 }
 0x3ff   :  { %v1155_v29 = vpop.eup %1154  ;;  %v1041_v21 = vadd.f32 -1.0, %v1153_v16  ;;  %v824_v41 = vmul.f32 1.6732632, %v1040_v20  ;;  %v839_v35 = vsel %vm831_vm12, %v776_v1, %v823_v34 }
 0x400   :  { %v1157_v30 = vpop.eup %1156  ;;  %v1036_v38 = vadd.f32 -1.0, %v1155_v29  ;;  %v822_v45 = vmul.f32 1.6732632, %v1038_v32  ;;  %v847_v53 = vmul.f32 1.050701, %v839_v35 }
 0x401   :  { %v1042_v33 = vadd.f32 -1.0, %v1157_v30  ;;  %v825_v36 = vmul.f32 1.6732632, %v1041_v21  ;;  %v840_v40 = vsel %vm832_vm14, %v780_v3, %v824_v41 }
 0x402   :  { %v1159_v37 = vpop.eup %1158  ;;  %v820_v39 = vmul.f32 1.6732632, %v1036_v38  ;;  %v838_v52 = vsel %vm830_vm1, %v1514_v59, %v822_v45  ;;  %v848_v57 = vmul.f32 1.050701, %v840_v40  ;;  %v854_v54 = vpack.c.bf16 %v847_v53, %v845_v63  ;;  %v852_v59 = vld [vmem:[%s1538_s5] sm:$0x1] }
 0x403   :  { %v826_v42 = vmul.f32 1.6732632, %v1042_v33  ;;  %v1043_v44 = vadd.f32 -1.0, %v1159_v37  ;;  %v841_v47 = vsel %vm833_vm13, %v782_v58, %v825_v36  ;;  %v846_v4 = vmul.f32 1.050701, %v838_v52  ;;  %s940_s5 = sshll.u32 %s1184_s2, 4  ;;  %s941_s5 = int_to_ptr.vmem [resolvable:$true] %s940_s5 }
 0x404   :  { %v849_v55 = vmul.f32 1.050701, %v841_v47  ;;  %v836_v61 = vsel %vm828_vm2, %v1516_v60, %v820_v39  ;;  %v1183_v60 = vmov 1966171168   ;;  %v865_v58 = vsub.s32 0, %v864_v8  ;;  %s1160_s16 = scalar_lea.vmem %s941_s5, 32  ;;  %p1165_p1 = scmp.lt.s32.totalorder %s941_s5, %s941_s5 }
 0x405   :  { %v842_v46 = vsel %vm834_vm11, %v784_v12, %v826_v42  ;;  %v827_v48 = vmul.f32 1.6732632, %v1043_v44  ;;  %v844_v3 = vmul.f32 1.050701, %v836_v61  ;;  %v915_v7 = vunpack.c.l.s4 %v1183_v60  ;;  %p1161_p0 = scmp.ne.s32.totalorder %s941_s5, %s1160_s16  ;;  %p1166_p2 = scmp.lt.s32.totalorder %s1160_s16, %s1160_s16 }
 0x406   :  { %v850_v50 = vmul.f32 1.050701, %v842_v46  ;;  %v866_v0 = vrot.slane %v861_v9, %v865_v58 }
 0x407   :  { %v843_v51 = vsel %vm835_vm0, %v786_v18, %v827_v48  ;;  %v853_v5 = vpack.c.bf16 %v846_v4, %v844_v3  ;;  %v916_v10 = vunpack.c.0.s8 %v915_v7  ;;  %p1167_p3 = por %p1166_p2, %p1165_p1 }
 0x408   :  { %v851_v56 = vmul.f32 1.050701, %v843_v51  ;;  %v855_v2 = vpack.c.bf16 %v850_v50, %v848_v57 }
 0x409   :  { %v919_v14 = vsub.s32 %v916_v10, %v864_v8  ;;  %p1168_p4 = pnand %p1167_p3, %p1161_p0 }
 0x40a   :  { %v856_v1 = vpack.c.bf16 %v851_v56, %v849_v55 }
 0x40c   :  { %882 = vmatprep.subr.bf16.mxu1 %v856_v1 }
 0x40d   :  { %883 = vmatpush1.bf16.msra.mxu1 %v855_v2 }
 0x40e   :  { %884 = vmatprep.subr.bf16.mxu1 %v854_v54 }
 0x411   :  { %885 = vmatpush1.bf16.msra.mxu1 %v853_v5 }
 0x414   :  { %1044 = vmatmul.mubr.msk.bf16.vlgmr.msra.gmra.mxu1 %vm394_vm9, %v852_v59  ;;  %vm931_vm9 = vcmp.lt.s32.totalorder %v863_v6, 256 }
 0x4d4   :  { %v904_v62 = vpop.f32.mrf.mxu1 }
 0x4d5   :  { %v905_v12 = vadd.f32 %v904_v62, %v866_v0 }
 0x4d6   :  { %v906_v11 = vpop.f32.mrf.mxu1 }
 0x4d7   :  { %v907_v13 = vadd.f32 %v906_v11, %v866_v0 }
 0x4d8   :  { %v908_v15 = vpop.f32.mrf.mxu1 }
 0x4d9   :  { %v913_v17 = vcombine.low %v905_v12, %v907_v13 }
 0x4da   :  { %v909_v18 = vpop.f32.mrf.mxu1 }
 0x4db   :  { %v920_v19 = vrot.slane %v913_v17, %v919_v14 }
 0x4dd   :  { %v927_v22 = vrot.slane %v920_v19, %v919_v14 }
 0x4df   :  { %933 = vst.msk [vmem:[#allocation3] sm:$0x3] %vm931_vm9, %v927_v22 }
 0x4e0   :  { %1171 = shalt.err (!%p1168_p4)
}
 0x4e1   :  { %943 = dma.vmem_to_hbm [thread:$0]  %s941_s5, 32, %s1540_s7, [#allocation4]  }
 0x4e2   :  { %1180 = dma.done.wait [#allocation4], 32  }
 0x4e3   :  { %1181 = vsyncadd [#allocation4], 4294967264 }
 0x4e4   :  { %947 = vsyncpa [#allocation4], 1 }

</bundles_post_ra>
